<compile_context>
chip_gen: v5e
topology: v5e:2x2
jax: 0.10.0
libtpu: 0.0.40
codegen_flags: <defaults>
</compile_context>

<pallas_src>
import math

import jax
import jax.numpy as jnp
from jax.experimental import pallas as pl
from jax.experimental.pallas import tpu as pltpu

D_K = 64   # module-level d_k in the PyTorch spec (scale = 1/sqrt(64))
D_V = 64


def _sdpa_kernel(q_ref, k_ref, v_ref, mask_ref, ctx_ref, attn_ref):
    # Blocks: q (G, Lq, d_k), k (G, Lk, d_k), v (G, Lk, d_v), mask (G, Lq, Lk).
    scale = jnp.asarray(1.0 / math.sqrt(D_K), q_ref.dtype)
    q = q_ref[...] * scale          # fold 1/sqrt(d_k) into Q
    k = k_ref[...]
    v = v_ref[...]

    # scores = (Q / sqrt(d_k)) @ K^T, contracting last dims (no k.T relayout).
    scores = jnp.einsum("gqd,gkd->gqk", q, k,
                        preferred_element_type=jnp.float32)

    # masked_fill_(attn_mask, -1e9); widen int8 mask to f32 layout, then select.
    mask_f = mask_ref[...].astype(jnp.float32)
    scores = jnp.where(mask_f != 0.0, jnp.float32(-1.0e9), scores)

    # numerically stable softmax over keys
    row_max = jnp.max(scores, axis=-1, keepdims=True)
    e = jnp.exp(scores - row_max)
    denom = jnp.sum(e, axis=-1, keepdims=True)
    attn = e * pl.reciprocal(denom, approx=False)   # exact: matches torch softmax

    # context = attn @ V
    ctx = jnp.einsum("gqk,gkd->gqd", attn.astype(v.dtype), v,
                     preferred_element_type=jnp.float32)

    attn_ref[...] = attn.astype(attn_ref.dtype)
    ctx_ref[...] = ctx.astype(ctx_ref.dtype)


def _pad_to(x, m):
    return -(-x // m) * m


def _choose_group_size(bh, lq, lk, dk, dv, itemsize, budget_bytes=8 << 20):
    """Largest divisor of bh whose double-buffered VMEM footprint fits the budget."""
    lq8, lk8 = _pad_to(lq, 8), _pad_to(lk, 8)
    dk_l, dv_l, lk_l = _pad_to(dk, 128), _pad_to(dv, 128), _pad_to(lk, 128)
    per_head = (
        (lq8 * dk_l + lk8 * dk_l + lk8 * dv_l) * itemsize  # q, k, v blocks
        + _pad_to(lq, 32) * lk_l * 1                        # int8 mask block
        + lq8 * dv_l * itemsize                             # ctx block
        + lq8 * lk_l * 4                                    # attn block (f32 worst case)
    )
    per_head *= 2  # double-buffered pipeline
    cap = max(1, budget_bytes // per_head)
    g = 1
    for cand in range(1, bh + 1):
        if bh % cand == 0 and cand <= cap:
            g = cand
    return g


def scaled_dot_product_attention(Q, K, V, attn_mask):
    """Q: (B,H,Lq,d_k), K: (B,H,Lk,d_k), V: (B,H,Lk,d_v), attn_mask: (B,H,Lq,Lk).

    Returns (context (B,H,Lq,d_v), attn (B,H,Lq,Lk)) — same as the PyTorch module.
    """
    B, H, Lq, dk = Q.shape
    Lk = K.shape[2]
    dv = V.shape[3]
    BH = B * H
    out_dtype = Q.dtype
    itemsize = jnp.dtype(out_dtype).itemsize

    q = Q.reshape(BH, Lq, dk)                         # no dtype up-cast
    k = K.reshape(BH, Lk, dk)
    v = V.reshape(BH, Lk, dv)
    m = attn_mask.reshape(BH, Lq, Lk).astype(jnp.int8)

    G = _choose_group_size(BH, Lq, Lk, dk, dv, itemsize)
    n_steps = BH // G

    # TODO(synk): for padding-style masks a scalar-prefetched length table would
    # remove the materialized (B,H,Lq,Lk) mask DMA, but the module's interface
    # takes an arbitrary mask tensor, so it is kept.
    grid_spec = pltpu.PrefetchScalarGridSpec(
        num_scalar_prefetch=0,
        grid=(n_steps,),
        in_specs=[
            pl.BlockSpec((G, Lq, dk), lambda i: (i, 0, 0)),
            pl.BlockSpec((G, Lk, dk), lambda i: (i, 0, 0)),
            pl.BlockSpec((G, Lk, dv), lambda i: (i, 0, 0)),
            pl.BlockSpec((G, Lq, Lk), lambda i: (i, 0, 0)),
        ],
        out_specs=[
            pl.BlockSpec((G, Lq, dv), lambda i: (i, 0, 0)),
            pl.BlockSpec((G, Lq, Lk), lambda i: (i, 0, 0)),
        ],
    )

    flops = 2 * BH * Lq * Lk * (dk + dv) + 6 * BH * Lq * Lk
    bytes_accessed = (
        (BH * Lq * dk + BH * Lk * dk + BH * Lk * dv) * itemsize  # Q, K, V
        + BH * Lq * Lk * 1                                        # mask (int8)
        + BH * Lq * dv * itemsize                                 # context out
        + BH * Lq * Lk * itemsize                                 # attn out
    )
    cost = pl.CostEstimate(flops=flops,
                           transcendentals=BH * Lq * Lk,
                           bytes_accessed=bytes_accessed)

    ctx, attn = pl.pallas_call(
        _sdpa_kernel,
        out_shape=(
            jax.ShapeDtypeStruct((BH, Lq, dv), out_dtype),
            jax.ShapeDtypeStruct((BH, Lq, Lk), out_dtype),
        ),
        grid_spec=grid_spec,
        compiler_params=pltpu.CompilerParams(
            dimension_semantics=("parallel",),
        ),
        cost_estimate=cost,
    )(q, k, v, m)

    return ctx.reshape(B, H, Lq, dv), attn.reshape(B, H, Lq, Lk)


def _reference(Q, K, V, attn_mask):
    scores = jnp.einsum("bhqd,bhkd->bhqk", Q, K) / math.sqrt(D_K)
    scores = jnp.where(attn_mask, -1.0e9, scores)
    attn = jax.nn.softmax(scores, axis=-1)
    ctx = jnp.einsum("bhqk,bhkd->bhqd", attn, V)
    return ctx, attn


if __name__ == "__main__":
    key = jax.random.PRNGKey(0)
    kq, kk, kv, km = jax.random.split(key, 4)

    B, H, Lq, Lk = 2, 2, 8, 8
    Q = jax.random.normal(kq, (B, H, Lq, D_K), dtype=jnp.float32)
    K = jax.random.normal(kk, (B, H, Lk, D_K), dtype=jnp.float32)
    V = jax.random.normal(kv, (B, H, Lk, D_V), dtype=jnp.float32)
    # Random padding-style mask (True = masked out), keep at least one unmasked
    # key per query row so softmax is well defined (mirrors padding masks).
    attn_mask = jax.random.bernoulli(km, p=0.25, shape=(B, H, Lq, Lk))
    attn_mask = attn_mask.at[..., 0].set(False)

    ctx, attn = scaled_dot_product_attention(Q, K, V, attn_mask)
    jax.block_until_ready((ctx, attn))

    ctx_ref, attn_ref = _reference(Q, K, V, attn_mask)
    assert jnp.allclose(ctx, ctx_ref, atol=1e-4, rtol=1e-4)
    assert jnp.allclose(attn, attn_ref, atol=1e-4, rtol=1e-4)

    print("KERNEL_OK")
</pallas_src>

<mosaic_0001>
module attributes {stable_mosaic.version = 11 : i64} {
  func.func @_sdpa_kernel(%arg0: i32, %arg1: memref<4x8x64xf32, #tpu.memory_space<vmem>>, %arg2: memref<4x8x64xf32, #tpu.memory_space<vmem>>, %arg3: memref<4x8x64xf32, #tpu.memory_space<vmem>>, %arg4: memref<4x8x8xi8, #tpu.memory_space<vmem>>, %arg5: memref<4x8x64xf32, #tpu.memory_space<vmem>>, %arg6: memref<4x8x8xf32, #tpu.memory_space<vmem>>) attributes {dimension_semantics = [#tpu.dimension_semantics<parallel>], iteration_bounds = array<i64: 1>, scalar_prefetch = 0 : i64, scratch_operands = 0 : i64, tpu.core_type = #tpu.core_type<tc>, window_params = [{transform_indices = @transform_0, window_bounds = array<i64: 4, 8, 64>}, {transform_indices = @transform_1, window_bounds = array<i64: 4, 8, 64>}, {transform_indices = @transform_2, window_bounds = array<i64: 4, 8, 64>}, {transform_indices = @transform_3, window_bounds = array<i64: 4, 8, 8>}, {transform_indices = @transform_4, window_bounds = array<i64: 4, 8, 64>}, {transform_indices = @transform_5, window_bounds = array<i64: 4, 8, 8>}]} {
    %c0 = arith.constant 0 : index
    %c0_0 = arith.constant 0 : index
    %c0_1 = arith.constant 0 : index
    %0 = vector.load %arg1[%c0, %c0_0, %c0_1] : memref<4x8x64xf32, #tpu.memory_space<vmem>>, vector<4x8x64xf32>
    %cst = arith.constant 1.250000e-01 : f32
    %1 = vector.broadcast %cst : f32 to vector<4x8x64xf32>
    %2 = arith.mulf %0, %1 : vector<4x8x64xf32>
    %c0_2 = arith.constant 0 : index
    %c0_3 = arith.constant 0 : index
    %c0_4 = arith.constant 0 : index
    %3 = vector.load %arg2[%c0_2, %c0_3, %c0_4] : memref<4x8x64xf32, #tpu.memory_space<vmem>>, vector<4x8x64xf32>
    %c0_5 = arith.constant 0 : index
    %c0_6 = arith.constant 0 : index
    %c0_7 = arith.constant 0 : index
    %4 = vector.load %arg3[%c0_5, %c0_6, %c0_7] : memref<4x8x64xf32, #tpu.memory_space<vmem>>, vector<4x8x64xf32>
    "tpu.trace_start"() <{level = 10 : i32, message = "gqd,gkd->gqk"}> : () -> ()
    %cst_8 = arith.constant dense<0.000000e+00> : vector<4x8x8xf32>
    %5 = tpu.matmul %2, %3, %cst_8 {dimension_numbers = #tpu.dot_dimension_numbers<[2], [2], [1], [1], [0, 0, 0, 1, 1, 1], [0], [0]>} : vector<4x8x64xf32>, vector<4x8x64xf32>, vector<4x8x8xf32> -> vector<4x8x8xf32>
    "tpu.trace_stop"() : () -> ()
    %c0_9 = arith.constant 0 : index
    %c0_10 = arith.constant 0 : index
    %c0_11 = arith.constant 0 : index
    %6 = vector.load %arg4[%c0_9, %c0_10, %c0_11] : memref<4x8x8xi8, #tpu.memory_space<vmem>>, vector<4x8x8xi8>
    %7 = arith.sitofp %6 : vector<4x8x8xi8> to vector<4x8x8xf32>
    %cst_12 = arith.constant 0.000000e+00 : f32
    %8 = vector.broadcast %cst_12 : f32 to vector<4x8x8xf32>
    %9 = arith.cmpf one, %7, %8 : vector<4x8x8xf32>
    %cst_13 = arith.constant -1.000000e+09 : f32
    %10 = vector.broadcast %cst_13 : f32 to vector<4x8x8xf32>
    %11 = arith.select %9, %10, %5 : vector<4x8x8xi1>, vector<4x8x8xf32>
    %cst_14 = arith.constant dense<0xFF800000> : vector<4x8xf32>
    %12 = vector.multi_reduction <maximumf>, %11, %cst_14 [2] : vector<4x8x8xf32> to vector<4x8xf32>
    %13 = vector.shape_cast %12 : vector<4x8xf32> to vector<4x8x1xf32>
    %14 = vector.broadcast %13 : vector<4x8x1xf32> to vector<4x8x8xf32>
    %15 = arith.subf %11, %14 : vector<4x8x8xf32>
    %16 = math.exp %15 : vector<4x8x8xf32>
    %cst_15 = arith.constant dense<0.000000e+00> : vector<4x8xf32>
    %17 = vector.multi_reduction <add>, %16, %cst_15 [2] : vector<4x8x8xf32> to vector<4x8xf32>
    %18 = vector.shape_cast %17 : vector<4x8xf32> to vector<4x8x1xf32>
    %19 = tpu.reciprocal %18 : vector<4x8x1xf32> -> vector<4x8x1xf32>
    %20 = vector.broadcast %19 : vector<4x8x1xf32> to vector<4x8x8xf32>
    %21 = arith.mulf %16, %20 : vector<4x8x8xf32>
    "tpu.trace_start"() <{level = 10 : i32, message = "gqk,gkd->gqd"}> : () -> ()
    %cst_16 = arith.constant dense<0.000000e+00> : vector<4x8x64xf32>
    %22 = tpu.matmul %21, %4, %cst_16 {dimension_numbers = #tpu.dot_dimension_numbers<[2], [1], [1], [2], [0, 0, 0, 1, 1, 2], [0], [0]>} : vector<4x8x8xf32>, vector<4x8x64xf32>, vector<4x8x64xf32> -> vector<4x8x64xf32>
    "tpu.trace_stop"() : () -> ()
    %c0_17 = arith.constant 0 : index
    %c0_18 = arith.constant 0 : index
    %c0_19 = arith.constant 0 : index
    %23 = vector.load %arg6[%c0_17, %c0_18, %c0_19] : memref<4x8x8xf32, #tpu.memory_space<vmem>>, vector<4x8x8xf32>
    tpu.vector_store %arg6[%c0_17, %c0_18, %c0_19], %21 {strides = array<i32>} : memref<4x8x8xf32, #tpu.memory_space<vmem>>, vector<4x8x8xf32>,
    %c0_20 = arith.constant 0 : index
    %c0_21 = arith.constant 0 : index
    %c0_22 = arith.constant 0 : index
    %24 = vector.load %arg5[%c0_20, %c0_21, %c0_22] : memref<4x8x64xf32, #tpu.memory_space<vmem>>, vector<4x8x64xf32>
    tpu.vector_store %arg5[%c0_20, %c0_21, %c0_22], %22 {strides = array<i32>} : memref<4x8x64xf32, #tpu.memory_space<vmem>>, vector<4x8x64xf32>,
    return
  }
  func.func @transform_0(%arg0: i32) -> (i32, i32, i32) {
    %c0_i32 = arith.constant 0 : i32
    %c0_i32_0 = arith.constant 0 : i32
    %c0_i32_1 = arith.constant 0 : i32
    return %arg0, %c0_i32, %c0_i32_0 : i32, i32, i32
  }
  func.func @transform_1(%arg0: i32) -> (i32, i32, i32) {
    %c0_i32 = arith.constant 0 : i32
    %c0_i32_0 = arith.constant 0 : i32
    %c0_i32_1 = arith.constant 0 : i32
    return %arg0, %c0_i32, %c0_i32_0 : i32, i32, i32
  }
  func.func @transform_2(%arg0: i32) -> (i32, i32, i32) {
    %c0_i32 = arith.constant 0 : i32
    %c0_i32_0 = arith.constant 0 : i32
    %c0_i32_1 = arith.constant 0 : i32
    return %arg0, %c0_i32, %c0_i32_0 : i32, i32, i32
  }
  func.func @transform_3(%arg0: i32) -> (i32, i32, i32) {
    %c0_i32 = arith.constant 0 : i32
    %c0_i32_0 = arith.constant 0 : i32
    %c0_i32_1 = arith.constant 0 : i32
    return %arg0, %c0_i32, %c0_i32_0 : i32, i32, i32
  }
  func.func @transform_4(%arg0: i32) -> (i32, i32, i32) {
    %c0_i32 = arith.constant 0 : i32
    %c0_i32_0 = arith.constant 0 : i32
    %c0_i32_1 = arith.constant 0 : i32
    return %arg0, %c0_i32, %c0_i32_0 : i32, i32, i32
  }
  func.func @transform_5(%arg0: i32) -> (i32, i32, i32) {
    %c0_i32 = arith.constant 0 : i32
    %c0_i32_0 = arith.constant 0 : i32
    %c0_i32_1 = arith.constant 0 : i32
    return %arg0, %c0_i32, %c0_i32_0 : i32, i32, i32
  }
}

</mosaic_0001>

<bundles_post_ra>
// kernel: tpu_custom_call.1
= control target key start
LH: loop header
LB: loop body
LE: loop exit
PB: predicated region body
PF: predicated region fallthrough
CT: control target
= control target key end

     0   :  { %11 = vsyncpa [#allocation3], 0  ;;  %s775_s0 = inlined_call_operand.hbm [shape: f32[4,8,64], index: 0, kind: input, shape index: {}]   ;;  %s776_s1 = inlined_call_operand.hbm [shape: f32[4,8,64], index: 1, kind: input, shape index: {}]   ;;  %s777_s2 = inlined_call_operand.hbm [shape: f32[4,8,64], index: 2, kind: input, shape index: {}]   ;;  %s778_s3 = inlined_call_operand.hbm [shape: s8[4,8,8], index: 3, kind: input, shape index: {}]   ;;  %s779_s4 = inlined_call_operand.hbm [shape: f32[4,8,64], index: 4, kind: output, shape index: {0}]   ;;  %s780_s5 = inlined_call_operand.hbm [shape: f32[4,8,8], index: 5, kind: output, shape index: {1}]  }
   0x1   :  { %12 = vsyncpa [#allocation6], 0 }
   0x2   :  { %13 = vsyncpa [#allocation9], 0 }
   0x3   :  { %14 = vsyncpa [#allocation4], 0 }
   0x4   :  { %15 = vsyncpa [#allocation12], 0  ;;  %s33_s20 = sshll.u32 %s776_s1, 4  ;;  %s662_s21 = smov [#allocation5]   ;;  %s34_s20 = int_to_ptr.hbm [resolvable:$true] %s33_s20 }
   0x5   :  { %s35_s22 = sshll.u32 %s662_s21, 4  ;;  %s20_s25 = sshll.u32 %s775_s0, 4  ;;  %s36_s22 = int_to_ptr.vmem [resolvable:$true] %s35_s22  ;;  %s21_s25 = int_to_ptr.hbm [resolvable:$true] %s20_s25 }
   0x6   :  { %s663_s26 = smov 128   ;;  %s664_s27 = smov 8  }
   0x7   :  { %41 = dma.hbm_to_vmem [thread:$0]  %s34_s20, 512, %s36_s22, [#allocation6], %s663_s26, %s663_s26, %s664_s27  }
   0x8   :  { %s665_s28 = smov [#allocation2]   ;;  %s46_s1 = sshll.u32 %s777_s2, 4  ;;  %s47_s1 = int_to_ptr.hbm [resolvable:$true] %s46_s1 }
   0x9   :  { %s22_s29 = sshll.u32 %s665_s28, 4  ;;  %s59_s8 = sshll.u32 %s778_s3, 4  ;;  %s23_s29 = int_to_ptr.vmem [resolvable:$true] %s22_s29  ;;  %s60_s8 = int_to_ptr.hbm [resolvable:$true] %s59_s8 }
   0xa   :  { %28 = dma.hbm_to_vmem [thread:$0]  %s21_s25, 512, %s23_s29, [#allocation3], %s663_s26, %s663_s26, %s664_s27  }
   0xb   :  { %s666_s9 = smov [#allocation7]   ;;  %s667_s11 = smov [#allocation8]  }
   0xc   :  { %s48_s10 = sshll.u32 %s666_s9, 4  ;;  %s61_s2 = sshll.u32 %s667_s11, 4  ;;  %s49_s10 = int_to_ptr.vmem [resolvable:$true] %s48_s10  ;;  %s62_s2 = int_to_ptr.vmem [resolvable:$true] %s61_s2 }
   0xd   :  { %54 = dma.hbm_to_vmem [thread:$0]  %s47_s1, 512, %s49_s10, [#allocation6], %s663_s26, %s663_s26, %s664_s27  }
   0xe   :  { %s668_s12 = smov 32   ;;  %s669_s13 = smov 2  }
   0xf   :  { %67 = dma.hbm_to_vmem [thread:$0]  %s60_s8, 128, %s62_s2, [#allocation9], %s668_s12, %s668_s12, %s669_s13  }
  0x10   :  { %652 = dma.done.wait [#allocation3], 512  }
  0x11   :  { %653 = vsyncadd [#allocation3], 4294966784 }
  0x12   :  { %654 = dma.done.wait [#allocation6], 1024  }
  0x13   :  { %655 = vsyncadd [#allocation6], 4294966272 }
  0x14   :  { %656 = dma.done.wait [#allocation9], 128  }
  0x15   :  { %657 = vsyncadd [#allocation9], 4294967168  ;;  %vm100_vm0 = vcmask 523264   ;;  %v92_v0 = vld [vmem:[#allocation5] sm:$0xff]  ;;  %v94_v1 = vld [vmem:[#allocation5 + $0x10] sm:$0xff]  ;;  %vm225_vm2 = vcmask 64512  }
  0x16   :  { %v84_v2 = vld [vmem:[#allocation2] sm:$0xff]  ;;  %461 = vmatpush.xpose.msk.msra.mxu0 %vm100_vm0, %v92_v0  ;;  %465 = vmatpush.xpose.msk.msra.mxu2 %vm100_vm0, %v94_v1  ;;  %v86_v4 = vld [vmem:[#allocation2 + $0x10] sm:$0xff]  ;;  %v93_v5 = vld [vmem:[#allocation5 + $0x8] sm:$0xff]  ;;  %s670_s3 = smov [#allocation11]   ;;  %s441_s17 = sshll.u32 %s780_s5, 4  ;;  %s442_s17 = int_to_ptr.hbm [resolvable:$true] %s441_s17 }
  0x17   :  { %v88_v3 = vmul.f32 0.125, %v84_v2  ;;  %v95_v6 = vld [vmem:[#allocation5 + $0x18] sm:$0xff]  ;;  %v90_v7 = vmul.f32 0.125, %v86_v4  ;;  %463 = vmatpush.xpose.msk.msra.mxu1 %vm100_vm0, %v93_v5  ;;  %v85_v8 = vld [vmem:[#allocation2 + $0x8] sm:$0xff]  ;;  %v474_v12 = vld [vmem:[#allocation8] sm:$0xff]   ;;  %s439_s14 = sshll.u32 %s670_s3, 4  ;;  %s440_s14 = int_to_ptr.vmem [resolvable:$true] %s439_s14 }
  0x18   :  { %467 = vmatpush.xpose.msk.msra.mxu3 %vm100_vm0, %v95_v6  ;;  %v87_v9 = vld [vmem:[#allocation2 + $0x18] sm:$0xff]  ;;  %v89_v10 = vmul.f32 0.125, %v85_v8  ;;  %v475_v13 = vunpack.c.0.s8 %v474_v12  ;;  %v476_v15 = vunpack.c.1.s8 %v474_v12  ;;  %v479_v16 = vunpack.c.2.s8 %v474_v12  ;;  %v96_v53 = vld [vmem:[#allocation7] sm:$0xff]  ;;  %v98_v54 = vld [vmem:[#allocation7 + $0x10] sm:$0xff]  ;;  %s671_s18 = smov [#allocation10]   ;;  %s428_s5 = sshll.u32 %s779_s4, 4  ;;  %s429_s5 = int_to_ptr.hbm [resolvable:$true] %s428_s5 }
  0x19   :  { %v91_v11 = vmul.f32 0.125, %v87_v9  ;;  %462 = vmatmul.msk.f32.vlgmr.msra.gmra.mxu0 %vm100_vm0, %v88_v3  ;;  %466 = vmatmul.msk.f32.vlgmr.msra.gmra.mxu2 %vm100_vm0, %v90_v7  ;;  %v480_v20 = vunpack.c.3.s8 %v474_v12  ;;  %v97_v55 = vld [vmem:[#allocation7 + $0x8] sm:$0xff]  ;;  %v99_v56 = vld [vmem:[#allocation7 + $0x18] sm:$0xff]  ;;  %s426_s19 = sshll.u32 %s671_s18, 4  ;;  %s427_s19 = int_to_ptr.vmem [resolvable:$true] %s426_s19 }
  0x1a   :  { %464 = vmatmul.msk.f32.vlgmr.msra.gmra.mxu1 %vm100_vm0, %v89_v10  ;;  %v213_v14 = vcvt.s32.f32 %v475_v13  ;;  %v214_v17 = vcvt.s32.f32 %v476_v15  ;;  %v215_v19 = vcvt.s32.f32 %v479_v16  ;;  %340 = vmatpush.msrb.mxu0 %v96_v53 }
  0x1b   :  { %468 = vmatmul.msk.f32.vlgmr.msra.gmra.mxu3 %vm100_vm0, %v91_v11  ;;  %v216_v24 = vcvt.s32.f32 %v480_v20  ;;  %386 = vmatpush.msrb.mxu2 %v98_v54 }
  0x1c   :  { %vm217_vm1 = vcmp.ne.f32.partialorder %v213_v14, 0.0  ;;  %vm218_vm3 = vcmp.ne.f32.partialorder %v214_v17, 0.0  ;;  %vm219_vm4 = vcmp.ne.f32.partialorder %v215_v19, 0.0  ;;  %363 = vmatpush.msrb.mxu1 %v97_v55  ;;  %409 = vmatpush.msrb.mxu3 %v99_v56 }
  0x1d   :  { %vm220_vm5 = vcmp.ne.f32.partialorder %v216_v24, 0.0 }
  0x96   :  { %v124_v18 = vpop.f32.mrf.mxu0 }
  0x97   :  { %v221_v21 = vsel %vm217_vm1, -1e+09, %v124_v18  ;;  %v150_v23 = vpop.f32.mrf.mxu1 }
  0x98   :  { %v226_v22 = vsel %vm225_vm2, %v221_v21, -inf  ;;  %v222_v25 = vsel %vm218_vm3, -1e+09, %v150_v23 }
  0x99   :  { %227 = vmax.xlane.f32.xlu1 %v226_v22  ;;  %v229_v29 = vsel %vm225_vm2, %v222_v25, -inf }
  0x9c   :  { %v176_v26 = vpop.f32.mrf.mxu2 }
  0x9d   :  { %v223_v27 = vsel %vm219_vm4, -1e+09, %v176_v26 }
  0x9e   :  { %v232_v28 = vsel %vm225_vm2, %v223_v27, -inf  ;;  %v202_v30 = vpop.f32.mrf.mxu3 }
  0x9f   :  { %233 = vmax.xlane.f32.xlu0 %v232_v28  ;;  %v224_v31 = vsel %vm220_vm5, -1e+09, %v202_v30 }
  0xa0   :  { %v235_v32 = vsel %vm225_vm2, %v224_v31, -inf }
  0xa1   :  { %230 = vmax.xlane.f32.xlu1 %v229_v29 }
  0xa7   :  { %236 = vmax.xlane.f32.xlu0 %v235_v32 }
 0x10c   :  { %v228_v33 = vpop.xlane.xlu1 %227 }
 0x10d   :  { %v238_v34 = vsub.f32 %v221_v21, %v228_v33 }
 0x10f   :  { %v242_v35 = vmul.f32 1.442695, %v238_v34 }
 0x111   :  { %492 = vpow2.f32 %v242_v35 }
 0x112   :  { %v234_v36 = vpop.xlane.xlu0 %233 }
 0x113   :  { %v240_v37 = vsub.f32 %v223_v27, %v234_v36 }
 0x114   :  { %v231_v38 = vpop.xlane.xlu1 %230 }
 0x115   :  { %v246_v39 = vmul.f32 1.442695, %v240_v37  ;;  %v239_v40 = vsub.f32 %v222_v25, %v231_v38 }
 0x117   :  { %v493_v41 = vpop.eup %492  ;;  %494 = vpow2.f32 %v246_v39  ;;  %v244_v42 = vmul.f32 1.442695, %v239_v40 }
 0x118   :  { %v250_v43 = vsel %vm225_vm2, %v493_v41, 0.0 }
 0x119   :  { %496 = vpow2.f32 %v244_v42  ;;  %251 = vadd.xlane.f32.xlu0 %v250_v43 }
 0x11a   :  { %v237_v44 = vpop.xlane.xlu0 %236 }
 0x11b   :  { %v241_v45 = vsub.f32 %v224_v31, %v237_v44 }
 0x11d   :  { %v736_v46 = vpop.eup %494  ;;  %v248_v47 = vmul.f32 1.442695, %v241_v45 }
 0x11e   :  { %v256_v48 = vsel %vm225_vm2, %v736_v46, 0.0 }
 0x11f   :  { %v740_v49 = vpop.eup %496  ;;  %498 = vpow2.f32 %v248_v47  ;;  %257 = vadd.xlane.f32.xlu2 %v256_v48 }
 0x120   :  { %v253_v50 = vsel %vm225_vm2, %v740_v49, 0.0 }
 0x121   :  { %254 = vadd.xlane.f32.xlu1 %v253_v50 }
 0x125   :  { %v744_v51 = vpop.eup %498 }
 0x126   :  { %v259_v52 = vsel %vm225_vm2, %v744_v51, 0.0 }
 0x127   :  { %260 = vadd.xlane.f32.xlu2 %v259_v52 }
 0x18c   :  { %v252_v57 = vpop.xlane.xlu0 %251 }
 0x18d   :  { %500 = vrcp.f32 %v252_v57  ;;  %v273_v63 = vand.u32 2147483648, %v252_v57  ;;  %v271_v1 = vand.u32 2147483647, %v252_v57  ;;  %vm267_vm7 = vweird.f32 %v252_v57 }
 0x18f   :  { %v274_v7 = vor.u32 1.1754944e-38, %v273_v63  ;;  %vm272_vm9 = vcmp.eq.f32.partialorder %v271_v1, 8.507059e+37 }
 0x192   :  { %v258_v58 = vpop.xlane.xlu2 %257 }
 0x193   :  { %v501_v59 = vpop.eup %500  ;;  %502 = vrcp.f32 %v258_v58  ;;  %v299_v11 = vand.u32 2147483647, %v258_v58  ;;  %v301_v12 = vand.u32 2147483648, %v258_v58  ;;  %vm295_vm11 = vweird.f32 %v258_v58 }
 0x194   :  { %v263_v60 = vmul.f32 %v501_v59, %v252_v57  ;;  %v255_v61 = vpop.xlane.xlu1 %254  ;;  %vm268_vm6 = vweird.f32 %v501_v59 }
 0x195   :  { %504 = vrcp.f32 %v255_v61  ;;  %vm269_vm8 = vmor %vm267_vm7, %vm268_vm6  ;;  %v287_v17 = vand.u32 2147483648, %v255_v61  ;;  %v285_v20 = vand.u32 2147483647, %v255_v61  ;;  %vm300_vm14 = vcmp.eq.f32.partialorder %v299_v11, 8.507059e+37 }
 0x196   :  { %v264_v62 = vsub.f32 1.0, %v263_v60  ;;  %v302_v22 = vor.u32 1.1754944e-38, %v301_v12  ;;  %vm281_vm15 = vweird.f32 %v255_v61 }
 0x197   :  { %v288_v26 = vor.u32 1.1754944e-38, %v287_v17  ;;  %vm286_vm3 = vcmp.eq.f32.partialorder %v285_v20, 8.507059e+37 }
 0x198   :  { %v265_v0 = vmul.f32 %v501_v59, %v264_v62 }
 0x199   :  { %v503_v2 = vpop.eup %502 }
 0x19a   :  { %v266_v3 = vadd.f32 %v501_v59, %v265_v0  ;;  %v291_v4 = vmul.f32 %v503_v2, %v258_v58  ;;  %v261_v5 = vpop.xlane.xlu2 %260  ;;  %vm296_vm10 = vweird.f32 %v503_v2 }
 0x19b   :  { %v505_v6 = vpop.eup %504  ;;  %506 = vrcp.f32 %v261_v5  ;;  %vm297_vm13 = vmor %vm295_vm11, %vm296_vm10  ;;  %v315_v31 = vand.u32 2147483648, %v261_v5  ;;  %v313_v34 = vand.u32 2147483647, %v261_v5  ;;  %vm309_vm5 = vweird.f32 %v261_v5 }
 0x19c   :  { %v270_v8 = vsel %vm269_vm8, %v501_v59, %v266_v3  ;;  %v292_v9 = vsub.f32 1.0, %v291_v4  ;;  %v277_v10 = vmul.f32 %v505_v6, %v255_v61  ;;  %vm282_vm12 = vweird.f32 %v505_v6 }
 0x19d   :  { %v275_v13 = vsel %vm272_vm9, %v274_v7, %v270_v8  ;;  %vm283_vm1 = vmor %vm281_vm15, %vm282_vm12  ;;  %v316_v37 = vor.u32 1.1754944e-38, %v315_v31  ;;  %vm314_vm7 = vcmp.eq.f32.partialorder %v313_v34, 8.507059e+37 }
 0x19e   :  { %v293_v14 = vmul.f32 %v503_v2, %v292_v9  ;;  %v278_v15 = vsub.f32 1.0, %v277_v10  ;;  %v318_v16 = vmul.f32 %v493_v41, %v275_v13 }
 0x1a0   :  { %v294_v18 = vadd.f32 %v503_v2, %v293_v14  ;;  %v279_v19 = vmul.f32 %v505_v6, %v278_v15  ;;  %469 = vmatmul.msk.f32.vlgmr.msrb.gmra.mxu0 %vm225_vm2, %v318_v16  ;;  %414 = vst.msk [vmem:[#allocation11] sm:$0xff] %vm225_vm2, %v318_v16 }
 0x1a1   :  { %v507_v21 = vpop.eup %506 }
 0x1a2   :  { %v280_v23 = vadd.f32 %v505_v6, %v279_v19  ;;  %v305_v24 = vmul.f32 %v507_v21, %v261_v5  ;;  %v298_v25 = vsel %vm297_vm13, %v503_v2, %v294_v18  ;;  %vm310_vm4 = vweird.f32 %v507_v21 }
 0x1a3   :  { %v303_v27 = vsel %vm300_vm14, %v302_v22, %v298_v25  ;;  %vm311_vm6 = vmor %vm309_vm5, %vm310_vm4 }
 0x1a4   :  { %v284_v28 = vsel %vm283_vm1, %v505_v6, %v280_v23  ;;  %v306_v29 = vsub.f32 1.0, %v305_v24  ;;  %v320_v30 = vmul.f32 %v736_v46, %v303_v27 }
 0x1a5   :  { %v289_v32 = vsel %vm286_vm3, %v288_v26, %v284_v28 }
 0x1a6   :  { %v307_v33 = vmul.f32 %v507_v21, %v306_v29  ;;  %471 = vmatmul.msk.f32.vlgmr.msrb.gmra.mxu2 %vm225_vm2, %v320_v30  ;;  %416 = vst.msk [vmem:[#allocation11 + $0x10] sm:$0xff] %vm225_vm2, %v320_v30  ;;  %v319_v35 = vmul.f32 %v740_v49, %v289_v32 }
 0x1a8   :  { %v308_v36 = vadd.f32 %v507_v21, %v307_v33  ;;  %470 = vmatmul.msk.f32.vlgmr.msrb.gmra.mxu1 %vm225_vm2, %v319_v35  ;;  %415 = vst.msk [vmem:[#allocation11 + $0x8] sm:$0xff] %vm225_vm2, %v319_v35 }
 0x1aa   :  { %v312_v38 = vsel %vm311_vm6, %v507_v21, %v308_v36 }
 0x1ab   :  { %v317_v39 = vsel %vm314_vm7, %v316_v37, %v312_v38 }
 0x1ac   :  { %v321_v40 = vmul.f32 %v744_v51, %v317_v39 }
 0x1ae   :  { %472 = vmatmul.msk.f32.vlgmr.msrb.gmra.mxu3 %vm225_vm2, %v321_v40  ;;  %417 = vst.msk [vmem:[#allocation11 + $0x18] sm:$0xff] %vm225_vm2, %v321_v40 }
 0x1af   :  { %447 = dma.vmem_to_hbm [thread:$0]  %s440_s14, 512, %s442_s17, [#allocation12], %s663_s26, %s663_s26, %s664_s27  }
 0x21d   :  { %v342_v41 = vpop.f32.mrf.mxu0 }
 0x21e   :  { %418 = vst.msk [vmem:[#allocation10] sm:$0xff] %vm100_vm0, %v342_v41 }
 0x225   :  { %v365_v42 = vpop.f32.mrf.mxu1 }
 0x226   :  { %419 = vst.msk [vmem:[#allocation10 + $0x8] sm:$0xff] %vm100_vm0, %v365_v42 }
 0x229   :  { %v388_v43 = vpop.f32.mrf.mxu2 }
 0x22a   :  { %420 = vst.msk [vmem:[#allocation10 + $0x10] sm:$0xff] %vm100_vm0, %v388_v43 }
 0x231   :  { %v411_v44 = vpop.f32.mrf.mxu3 }
 0x232   :  { %421 = vst.msk [vmem:[#allocation10 + $0x18] sm:$0xff] %vm100_vm0, %v411_v44 }
 0x233   :  { %434 = dma.vmem_to_hbm [thread:$0]  %s427_s19, 512, %s429_s5, [#allocation4], %s663_s26, %s663_s26, %s664_s27  }
 0x234   :  { %658 = dma.done.wait [#allocation4], 512  }
 0x235   :  { %659 = vsyncadd [#allocation4], 4294966784 }
 0x236   :  { %660 = dma.done.wait [#allocation12], 512  }
 0x237   :  { %661 = vsyncadd [#allocation12], 4294966784 }
 0x238   :  { %456 = vsyncpa [#allocation3], 1 }
 0x239   :  { %457 = vsyncpa [#allocation6], 1 }
 0x23a   :  { %458 = vsyncpa [#allocation9], 1 }
 0x23b   :  { %459 = vsyncpa [#allocation4], 1 }
 0x23c   :  { %460 = vsyncpa [#allocation12], 1 }

</bundles_post_ra>
